<compile_context>
chip_gen: v7x
topology: tpu7x:2x2x1
jax: 0.10.0
libtpu: 0.0.40
codegen_flags: <defaults>
</compile_context>

<pallas_src>
import jax
import jax.numpy as jnp
from jax.experimental import pallas as pl
from jax.experimental.pallas import tpu as pltpu


def _round_up(x, m):
    return (x + m - 1) // m * m


def _vmem_limit_bytes():
    """Per-generation scoped-VMEM limit (safe fallback = v7x 64 MiB part)."""
    try:
        cap = int(pltpu.get_tpu_info().vmem_capacity_bytes)
    except Exception:
        cap = 64 * 1024 * 1024
    # ~96 MiB on 128 MiB parts (v5e/v6e), ~48 MiB on the 64 MiB v7x part.
    return max(32 * 1024 * 1024, min(cap * 3 // 4, 100 * 1024 * 1024))


def _pick_block_b(B, bytes_per_row, resident_bytes, vmem_limit):
    """Largest batch tile that fits double-buffered in VMEM; keep grid long
    enough for megacore/pipelining when B is big."""
    slack = 4 * 1024 * 1024
    tile_budget = max(1, vmem_limit - 2 * resident_bytes - slack)
    max_bb = max(8, tile_budget // max(1, 2 * bytes_per_row))  # x + out, 2 bufs each
    bb = min(max_bb, B)
    # If the whole batch fits in one step but B is large, keep >= 8 grid steps
    # (both v7x TensorCores + DMA/compute overlap) with tiles still >= 128 rows.
    if bb >= B and B >= 8 * 128:
        bb = -(-B // 8)
    bb = min(bb, B)
    if bb < B:
        bb = max(8, (bb // 8) * 8)  # sublane-aligned blocks when tiling
    else:
        bb = B                      # full-extent block: no alignment needed
    return bb


# ----------------------------- kernels ------------------------------------ #

def _nconv_kernel_dense(ak_ref, x_ref, o_ref):
    # ak_ref: (W*L, V*L) resident; x_ref: (B_t, W*L); o_ref: (B_t, V*L)
    o_ref[...] = jnp.dot(
        x_ref[...], ak_ref[...], preferred_element_type=jnp.float32
    ).astype(o_ref.dtype)


def _nconv_kernel_loop(a_ref, x_ref, o_ref):
    # a_ref: (V, W) resident; x_ref: (B_t, W, L); o_ref: (B_t, V, L)
    a = a_ref[...]
    for b in range(x_ref.shape[0]):
        o_ref[b] = jnp.dot(
            a, x_ref[b], preferred_element_type=jnp.float32
        ).astype(o_ref.dtype)


# ----------------------------- wrapper ------------------------------------ #

def nconv(x, A, *, block_b=None):
    """x: (N, C, W, L), A: (V, W) -> (N, C, V, L).

    Equivalent to torch.einsum('ncwl,vw->ncvl', x, A).contiguous().
    """
    N, C, W, L = x.shape
    V, W2 = A.shape
    assert W == W2, "contraction-dim mismatch between x and A"

    out_dtype = jnp.result_type(x.dtype, A.dtype)
    itemsize = jnp.dtype(out_dtype).itemsize
    B = N * C
    WL, VL = W * L, V * L

    vmem_limit = _vmem_limit_bytes()

    # Lane-padded footprint of the resident operand on the dense path.
    ak_bytes = _round_up(WL, 8) * _round_up(VL, 128) * itemsize
    # Use the lane-dense kron formulation while the xL flop inflation keeps us
    # under the f32 MXU ridge (~128 flop/B) and A_k stays comfortably resident.
    use_dense = (L < 128) and (WL <= 512) and (ak_bytes <= 8 * 1024 * 1024)

    if use_dense:
        x_in = x.reshape(B, WL).astype(out_dtype)               # free reshape
        # A_k[w*L + l', v*L + l] = A[v, w] * delta(l, l')
        A_k = jnp.kron(A.T.astype(out_dtype), jnp.eye(L, dtype=out_dtype))

        bytes_per_row = (_round_up(WL, 128) + _round_up(VL, 128)) * itemsize
        bb = block_b if block_b is not None else _pick_block_b(
            B, bytes_per_row, ak_bytes, vmem_limit)
        grid = (pl.cdiv(B, bb),)

        flops = 2 * B * WL * VL
        bytes_accessed = (B * (WL + VL) + WL * VL) * itemsize

        out_2d = pl.pallas_call(
            _nconv_kernel_dense,
            out_shape=jax.ShapeDtypeStruct((B, VL), out_dtype),
            grid=grid,
            in_specs=[
                pl.BlockSpec((WL, VL), lambda i: (0, 0)),   # A_k: resident
                pl.BlockSpec((bb, WL), lambda i: (i, 0)),   # x rows
            ],
            out_specs=pl.BlockSpec((bb, VL), lambda i: (i, 0)),
            compiler_params=pltpu.CompilerParams(
                dimension_semantics=("parallel",),
                vmem_limit_bytes=vmem_limit),
            cost_estimate=pl.CostEstimate(
                flops=flops, transcendentals=0, bytes_accessed=bytes_accessed),
        )(A_k, x_in)
        return out_2d.reshape(N, C, V, L)

    # Fallback for large W*L: per-batch MXU dots over a batch tile, A resident.
    x_in = x.reshape(B, W, L).astype(out_dtype)                 # free reshape
    a_in = A.astype(out_dtype)

    l_pad = _round_up(L, 128)
    bytes_per_row = (_round_up(W, 8) + _round_up(V, 8)) * l_pad * itemsize
    a_bytes = _round_up(V, 8) * _round_up(W, 128) * itemsize
    bb = block_b if block_b is not None else min(
        _pick_block_b(B, bytes_per_row, a_bytes, vmem_limit), 32)  # cap unroll
    grid = (pl.cdiv(B, bb),)

    flops = 2 * B * V * W * L
    bytes_accessed = (B * W * L + B * V * L + V * W) * itemsize

    out_3d = pl.pallas_call(
        _nconv_kernel_loop,
        out_shape=jax.ShapeDtypeStruct((B, V, L), out_dtype),
        grid=grid,
        in_specs=[
            pl.BlockSpec((V, W), lambda i: (0, 0)),            # A: resident
            pl.BlockSpec((bb, W, L), lambda i: (i, 0, 0)),     # x tile
        ],
        out_specs=pl.BlockSpec((bb, V, L), lambda i: (i, 0, 0)),
        compiler_params=pltpu.CompilerParams(
            dimension_semantics=("parallel",),
            vmem_limit_bytes=vmem_limit),
        cost_estimate=pl.CostEstimate(
            flops=flops, transcendentals=0, bytes_accessed=bytes_accessed),
    )(a_in, x_in)
    return out_3d.reshape(N, C, V, L)


if __name__ == "__main__":
    key = jax.random.PRNGKey(0)
    kx, ka = jax.random.split(key)

    # Small shapes consistent with the module: N=2 batch, C=4 channels,
    # W=16 input nodes, L=8 time steps, A maps W -> V with V=16.
    N, C, W, L, V = 2, 4, 16, 8, 16
    x = jax.random.normal(kx, (N, C, W, L), dtype=jnp.float32)
    A = jax.random.normal(ka, (V, W), dtype=jnp.float32)

    out = nconv(x, A)
    out = jax.block_until_ready(out)

    # Reference: same semantics as torch.einsum('ncwl,vw->ncvl', x, A).
    ref = jnp.einsum('ncwl,vw->ncvl', x, A,
                     precision=jax.lax.Precision.HIGHEST)
    assert out.shape == (N, C, V, L)
    assert jnp.allclose(out, ref, atol=1e-4, rtol=1e-4), "mismatch vs reference"

    print("KERNEL_OK")
</pallas_src>

<mosaic_0001>
module attributes {stable_mosaic.version = 11 : i64} {
  func.func @_nconv_kernel_dense(%arg0: i32, %arg1: memref<128x128xf32, #tpu.memory_space<vmem>>, %arg2: memref<8x128xf32, #tpu.memory_space<vmem>>, %arg3: memref<8x128xf32, #tpu.memory_space<vmem>>) attributes {dimension_semantics = [#tpu.dimension_semantics<parallel>], iteration_bounds = array<i64: 1>, scalar_prefetch = 0 : i64, scratch_operands = 0 : i64, tpu.core_type = #tpu.core_type<tc>, window_params = [{pipeline_mode = #tpu.pipeline_mode<synchronous>, transform_indices = @transform_0, window_bounds = array<i64: 128, 128>}, {transform_indices = @transform_1, window_bounds = array<i64: 8, 128>}, {transform_indices = @transform_2, window_bounds = array<i64: 8, 128>}]} {
    %c0 = arith.constant 0 : index
    %c0_0 = arith.constant 0 : index
    %0 = vector.load %arg2[%c0, %c0_0] : memref<8x128xf32, #tpu.memory_space<vmem>>, vector<8x128xf32>
    %c0_1 = arith.constant 0 : index
    %c0_2 = arith.constant 0 : index
    %1 = vector.load %arg1[%c0_1, %c0_2] : memref<128x128xf32, #tpu.memory_space<vmem>>, vector<128x128xf32>
    %cst = arith.constant dense<0.000000e+00> : vector<8x128xf32>
    %2 = tpu.matmul %0, %1, %cst {dimension_numbers = #tpu.dot_dimension_numbers<[1], [0], [0], [1], [0, 0, 1, 1], [], []>} : vector<8x128xf32>, vector<128x128xf32>, vector<8x128xf32> -> vector<8x128xf32>
    %c0_3 = arith.constant 0 : index
    %c0_4 = arith.constant 0 : index
    %3 = vector.load %arg3[%c0_3, %c0_4] : memref<8x128xf32, #tpu.memory_space<vmem>>, vector<8x128xf32>
    tpu.vector_store %arg3[%c0_3, %c0_4], %2 {strides = array<i32>} : memref<8x128xf32, #tpu.memory_space<vmem>>, vector<8x128xf32>,
    return
  }
  func.func @transform_0(%arg0: i32) -> (i32, i32) {
    %c0_i32 = arith.constant 0 : i32
    %c0_i32_0 = arith.constant 0 : i32
    %c0_i32_1 = arith.constant 0 : i32
    return %c0_i32, %c0_i32_0 : i32, i32
  }
  func.func @transform_1(%arg0: i32) -> (i32, i32) {
    %c0_i32 = arith.constant 0 : i32
    %c0_i32_0 = arith.constant 0 : i32
    return %arg0, %c0_i32 : i32, i32
  }
  func.func @transform_2(%arg0: i32) -> (i32, i32) {
    %c0_i32 = arith.constant 0 : i32
    %c0_i32_0 = arith.constant 0 : i32
    return %arg0, %c0_i32 : i32, i32
  }
}

</mosaic_0001>

<bundles_post_ra>
// kernel: tpu_custom_call.1
= control target key start
LH: loop header
LB: loop body
LE: loop exit
PB: predicated region body
PF: predicated region fallthrough
CT: control target
= control target key end

     0   :  { %7 = vsyncpa [#allocation3], 0  ;;  %s357_s0 = inlined_call_operand.hbm [shape: f32[128,128], index: 0, kind: input, shape index: {}]   ;;  %s358_s1 = inlined_call_operand.hbm [shape: f32[8,128], index: 1, kind: input, shape index: {}]   ;;  %s359_s2 = inlined_call_operand.hbm [shape: f32[8,128], index: 2, kind: output, shape index: {}]  }
   0x1   :  { %8 = vsyncpa [#allocation6], 0 }
   0x2   :  { %9 = vsyncpa [#allocation4], 0  ;;  %s298_s9 = smov [#allocation2]   ;;  %s226_s13 = scalar_lea.hbm %s357_s0, 2048 }
   0x3   :  { %s15_s10 = sshll.u32 %s298_s9, 4  ;;  %p227_p0 = scmp.ne.s32.totalorder %s357_s0, %s226_s13  ;;  %s16_s10 = int_to_ptr.vmem [resolvable:$true] %s15_s10 }
   0x4   :  { %p230_p1 = scmp.lt.u32.totalorder %s226_s13, %s357_s0 }
   0x6   :  { %p232_p2 = pnand %p230_p1, %p227_p0 }
   0x8   :  { %235 = shalt.err (!%p232_p2)
}
   0x9   :  { %s236_s18 = scalar_lea.vmem %s16_s10, 2048  ;;  %p241_p4 = scmp.lt.s32.totalorder %s16_s10, %s16_s10 }
   0xa   :  { %p237_p3 = scmp.ne.s32.totalorder %s16_s10, %s236_s18  ;;  %p242_p5 = scmp.lt.s32.totalorder %s236_s18, %s236_s18 }
   0xc   :  { %p243_p6 = por %p242_p5, %p241_p4 }
   0xe   :  { %p244_p7 = pnand %p243_p6, %p237_p3 }
  0x10   :  { %247 = shalt.err (!%p244_p7)
}
  0x11   :  { %s299_s19 = smov 128   ;;  %s300_s20 = smov 8  }
  0x12   :  { %21 = dma.hbm_to_vmem [thread:$0]  %s357_s0, 2048, %s16_s10, [#allocation3], %s299_s19, %s299_s19, %s300_s20  }
  0x13   :  { %s301_s23 = smov [#allocation5]   ;;  %s248_s27 = scalar_lea.hbm %s358_s1, 128 }
  0x14   :  { %s28_s24 = sshll.u32 %s301_s23, 4  ;;  %p249_p8 = scmp.ne.s32.totalorder %s358_s1, %s248_s27  ;;  %s29_s24 = int_to_ptr.vmem [resolvable:$true] %s28_s24 }
  0x15   :  { %p252_p9 = scmp.lt.u32.totalorder %s248_s27, %s358_s1 }
  0x17   :  { %p254_p10 = pnand %p252_p9, %p249_p8 }
  0x19   :  { %257 = shalt.err (!%p254_p10)
}
  0x1a   :  { %s258_s4 = scalar_lea.vmem %s29_s24, 128  ;;  %p263_p12 = scmp.lt.s32.totalorder %s29_s24, %s29_s24 }
  0x1b   :  { %p259_p11 = scmp.ne.s32.totalorder %s29_s24, %s258_s4  ;;  %p264_p13 = scmp.lt.s32.totalorder %s258_s4, %s258_s4 }
  0x1d   :  { %p265_p0 = por %p264_p13, %p263_p12 }
  0x1f   :  { %p266_p1 = pnand %p265_p0, %p259_p11 }
  0x21   :  { %269 = shalt.err (!%p266_p1)
}
  0x22   :  { %31 = dma.hbm_to_vmem [thread:$0]  %s358_s1, 128, %s29_s24, [#allocation6]  }
  0x23   :  { %292 = dma.done.wait [#allocation3], 2048  }
  0x24   :  { %293 = vsyncadd [#allocation3], 4294965248 }
  0x25   :  { %294 = dma.done.wait [#allocation6], 128  }
  0x26   :  { %295 = vsyncadd [#allocation6], 4294967168  ;;  %v302_v0 = vmov 0.0|0.0   ;;  %vm303_vm0 = vmmov 0   ;;  %v304_v1 = vmov 0.0   ;;  %v39_v2 = vld [vmem:[#allocation2] sm:$0xff] }
  0x27   :  { %194 = vmatprep.subr.bf16.mxu0 %v302_v0  ;;  %191 = vmatprep.mubr.msk.f32.mxu0 %vm303_vm0, %v304_v1  ;;  %v40_v3 = vld [vmem:[#allocation2 + $0x8] sm:$0xff]  ;;  %v41_v4 = vld [vmem:[#allocation2 + $0x10] sm:$0xff]  ;;  %v42_v6 = vld [vmem:[#allocation2 + $0x18] sm:$0xff]  ;;  %s305_s1 = smov [#allocation7]  }
  0x28   :  { %v195_v5 = vpack.c.bf16 %v40_v3, %v39_v2  ;;  %v198_v7 = vpack.c.bf16 %v42_v6, %v41_v4  ;;  %v43_v8 = vld [vmem:[#allocation2 + $0x20] sm:$0xff]  ;;  %v44_v9 = vld [vmem:[#allocation2 + $0x28] sm:$0xff]  ;;  %v45_v11 = vld [vmem:[#allocation2 + $0x30] sm:$0xff]  ;;  %s132_s6 = sshll.u32 %s305_s1, 4  ;;  %s133_s6 = int_to_ptr.vmem [resolvable:$true] %s132_s6 }
  0x29   :  { %v201_v10 = vpack.c.bf16 %v44_v9, %v43_v8  ;;  %v46_v12 = vld [vmem:[#allocation2 + $0x38] sm:$0xff]  ;;  %v47_v14 = vld [vmem:[#allocation2 + $0x40] sm:$0xff]  ;;  %v48_v15 = vld [vmem:[#allocation2 + $0x48] sm:$0xff]  ;;  %s270_s7 = scalar_lea.vmem %s133_s6, 128  ;;  %p275_p3 = scmp.lt.s32.totalorder %s133_s6, %s133_s6 }
  0x2a   :  { %196 = vmatpush3.bf16.msra.mxu0 %v195_v5  ;;  %v204_v13 = vpack.c.bf16 %v46_v12, %v45_v11  ;;  %v207_v16 = vpack.c.bf16 %v48_v15, %v47_v14  ;;  %v49_v17 = vld [vmem:[#allocation2 + $0x50] sm:$0xff]  ;;  %v50_v18 = vld [vmem:[#allocation2 + $0x58] sm:$0xff]  ;;  %v51_v20 = vld [vmem:[#allocation2 + $0x60] sm:$0xff]  ;;  %p271_p2 = scmp.ne.s32.totalorder %s133_s6, %s270_s7  ;;  %p276_p4 = scmp.lt.s32.totalorder %s270_s7, %s270_s7 }
  0x2b   :  { %197 = vmatprep.subr.bf16.mxu0 %v302_v0  ;;  %v210_v19 = vpack.c.bf16 %v50_v18, %v49_v17  ;;  %v52_v21 = vld [vmem:[#allocation2 + $0x68] sm:$0xff]  ;;  %v53_v23 = vld [vmem:[#allocation2 + $0x70] sm:$0xff]  ;;  %v54_v24 = vld [vmem:[#allocation2 + $0x78] sm:$0xff] }
  0x2c   :  { %v213_v22 = vpack.c.bf16 %v52_v21, %v51_v20  ;;  %v216_v25 = vpack.c.bf16 %v54_v24, %v53_v23  ;;  %v38_v26 = vld [vmem:[#allocation5] sm:$0xff]  ;;  %p277_p5 = por %p276_p4, %p275_p3 }
  0x2e   :  { %199 = vmatpush3.bf16.msra.mxu0 %v198_v7  ;;  %p278_p6 = pnand %p277_p5, %p271_p2 }
  0x2f   :  { %200 = vmatprep.subr.bf16.mxu0 %v302_v0 }
  0x32   :  { %202 = vmatpush3.bf16.msra.mxu0 %v201_v10 }
  0x33   :  { %203 = vmatprep.subr.bf16.mxu0 %v302_v0 }
  0x36   :  { %205 = vmatpush3.bf16.msra.mxu0 %v204_v13 }
  0x37   :  { %206 = vmatprep.subr.bf16.mxu0 %v302_v0 }
  0x3a   :  { %208 = vmatpush3.bf16.msra.mxu0 %v207_v16 }
  0x3b   :  { %209 = vmatprep.subr.bf16.mxu0 %v302_v0 }
  0x3e   :  { %211 = vmatpush3.bf16.msra.mxu0 %v210_v19 }
  0x3f   :  { %212 = vmatprep.subr.bf16.mxu0 %v302_v0 }
  0x42   :  { %214 = vmatpush3.bf16.msra.mxu0 %v213_v22 }
  0x43   :  { %215 = vmatprep.subr.bf16.mxu0 %v302_v0 }
  0x46   :  { %217 = vmatpush3.bf16.msra.mxu0 %v216_v25 }
  0x49   :  { %192 = vmatmul.mubr.f32.vlgmr.msra.gmra.mrb[0].mxu0 %v38_v26 }
 0x11c   :  { %v121_v27 = vpop.f32.mrb[0].mxu0 }
 0x11d   :  { %125 = vst [vmem:[#allocation7] sm:$0xff] %v121_v27  ;;  %v193_v28 = vpop.f32.mrb[1].mxu0 }
 0x11e   :  { %281 = shalt.err (!%p278_p6)
}
 0x11f   :  { %s282_s10 = scalar_lea.hbm %s359_s2, 128 }
 0x120   :  { %p283_p7 = scmp.ne.s32.totalorder %s359_s2, %s282_s10  ;;  %p286_p8 = scmp.lt.u32.totalorder %s282_s10, %s359_s2 }
 0x122   :  { %p288_p9 = pnand %p286_p8, %p283_p7 }
 0x124   :  { %291 = shalt.err (!%p288_p9)
}
 0x125   :  { %135 = dma.vmem_to_hbm [thread:$0]  %s133_s6, 128, %s359_s2, [#allocation4]  }
 0x126   :  { %296 = dma.done.wait [#allocation4], 128  }
 0x127   :  { %297 = vsyncadd [#allocation4], 4294967168 }
 0x128   :  { %139 = vsyncpa [#allocation3], 1 }
 0x129   :  { %140 = vsyncpa [#allocation6], 1 }
 0x12a   :  { %141 = vsyncpa [#allocation4], 1 }

</bundles_post_ra>
